<compile_context>
chip_gen: v6e
topology: v6e:2x2x1
jax: 0.10.0
libtpu: 0.0.40
codegen_flags: <defaults>
</compile_context>

<pallas_src>
import functools

import jax
import jax.numpy as jnp
import numpy as np
from jax.experimental import pallas as pl
from jax.experimental.pallas import tpu as pltpu


# ----------------------------- in-kernel helpers -----------------------------

def _layernorm(x, gamma, beta, eps=1e-5):
    # x: (R, D); gamma/beta: (1, D); all f32
    mu = jnp.mean(x, axis=-1, keepdims=True)
    xc = x - mu
    var = jnp.mean(xc * xc, axis=-1, keepdims=True)
    return xc * jax.lax.rsqrt(var + eps) * gamma + beta


# ----------------------------- fused Pallas kernel ----------------------------

def _fused_kernel(x_ref, vecs_ref, b1_ref, wqkv_ref, wout_ref, w1_ref, w2_ref,
                  lnf_g_ref, lnf_b_ref,
                  o_ref,
                  qkv_scr, mrg_scr,
                  *, heads, dim_head, batch_block, seq, mm_dtype):
    d = pl.program_id(1)                  # depth index (arbitrary / sequential)
    depth = pl.num_programs(1)
    inner = heads * dim_head
    scale = dim_head ** -0.5

    # The resident output block is the carried activation; load input once per group.
    @pl.when(d == 0)
    def _():
        o_ref[...] = x_ref[...]

    x = o_ref[...]                                        # (bbN, D) f32

    # packed per-layer vectors: rows 0..5 = ln1_g, ln1_b, b_out, ln2_g, ln2_b, b2
    vec = vecs_ref[0]                                     # (8, D) f32
    ln1_g, ln1_b, b_out = vec[0:1], vec[1:2], vec[2:3]
    ln2_g, ln2_b, b2 = vec[3:4], vec[4:5], vec[5:6]
    b1 = b1_ref[0]                                        # (1, mlp_dim) f32

    # ------------------------------- MSA -------------------------------
    xn = _layernorm(x, ln1_g, ln1_b)
    # flat, lane-dense QKV projection: (bbN, D) @ (D, 3*inner)
    qkv_scr[...] = jnp.dot(xn.astype(mm_dtype), wqkv_ref[0],
                           preferred_element_type=jnp.float32)

    # per-(batch, head) attention (inherently block-diagonal); contexts are written into
    # the merge scratch at their flat (row, lane) positions -> single out-projection matmul.
    for b in range(batch_block):
        r0 = b * seq
        for h in range(heads):
            c0 = h * dim_head
            q = qkv_scr[r0:r0 + seq, 0 * inner + c0:0 * inner + c0 + dim_head] * scale
            k = qkv_scr[r0:r0 + seq, 1 * inner + c0:1 * inner + c0 + dim_head]
            v = qkv_scr[r0:r0 + seq, 2 * inner + c0:2 * inner + c0 + dim_head]

            s = jnp.einsum('nd,md->nm', q, k,
                           preferred_element_type=jnp.float32)         # (N, N)
            m = jnp.max(s, axis=-1, keepdims=True)
            e = jnp.exp(s - m)
            p = e * pl.reciprocal(jnp.sum(e, axis=-1, keepdims=True), approx=True)

            mrg_scr[r0:r0 + seq, c0:c0 + dim_head] = jnp.dot(
                p, v, preferred_element_type=jnp.float32)              # (N, dh)

    # flat output projection: (bbN, inner) @ (inner, D), head-sum done inside the MXU
    attn = jnp.dot(mrg_scr[...].astype(mm_dtype), wout_ref[0],
                   preferred_element_type=jnp.float32) + b_out
    x = x + attn

    # ---------------------------- FeedForward ---------------------------
    xn2 = _layernorm(x, ln2_g, ln2_b)
    h1 = jnp.dot(xn2.astype(mm_dtype), w1_ref[0],
                 preferred_element_type=jnp.float32) + b1
    h1 = jnp.maximum(h1, 0.0)
    x = x + jnp.dot(h1.astype(mm_dtype), w2_ref[0],
                    preferred_element_type=jnp.float32) + b2

    o_ref[...] = x

    # final LayerNorm only on the last layer
    @pl.when(d == depth - 1)
    def _():
        o_ref[...] = _layernorm(x, lnf_g_ref[...], lnf_b_ref[...])


# ----------------------------- wrappers ---------------------------------------

def pack_layer_params(layer_params, matmul_dtype=jnp.bfloat16):
    """Stack per-layer params along depth; cast matmul weights to matmul_dtype;
    pack the tiny per-layer vectors into two slabs."""
    depth = len(layer_params)
    dim = layer_params[0][0].shape[-1]
    mlp_dim = layer_params[0][8].shape[-1]

    def stack(i, dtype):
        return jnp.stack([jnp.asarray(p[i]) for p in layer_params], axis=0).astype(dtype)

    wqkv = stack(2, matmul_dtype)                         # (depth, D, 3*inner)
    wout = stack(3, matmul_dtype)                         # (depth, inner, D)
    w1 = stack(7, matmul_dtype)                           # (depth, D, mlp_dim)
    w2 = stack(9, matmul_dtype)                           # (depth, mlp_dim, D)

    def row(i):
        return jnp.stack([jnp.asarray(p[i]).reshape(dim) for p in layer_params], axis=0)

    zero = jnp.zeros((depth, dim), jnp.float32)
    # rows: 0 ln1_g, 1 ln1_b, 2 b_out, 3 ln2_g, 4 ln2_b, 5 b2, 6-7 pad
    vecs = jnp.stack([row(0), row(1), row(4), row(5), row(6), row(10), zero, zero],
                     axis=1).astype(jnp.float32)          # (depth, 8, D)
    b1 = jnp.stack([jnp.asarray(p[8]).reshape(1, mlp_dim) for p in layer_params],
                   axis=0).astype(jnp.float32)            # (depth, 1, mlp_dim)
    return vecs, b1, wqkv, wout, w1, w2


def _vmem_limit_bytes(bbN, dim, inner, mlp_dim, w_bytes):
    act = bbN * dim * 4
    wts = (dim * 3 * inner + inner * dim + dim * mlp_dim + mlp_dim * dim) * w_bytes
    small = (8 * dim + mlp_dim + 2 * dim) * 4
    scratch = bbN * 4 * inner * 4
    work = bbN * max(3 * inner, mlp_dim, dim) * 4 * 4
    need = 3 * act + 2 * (wts + small) + scratch + work
    # floor 16 MiB, cap at 48 MiB so it stays inside v7x's 64 MiB VMEM with headroom
    return int(min(max(2 * need, 16 * 2 ** 20), 48 * 2 ** 20))


def tdmsanet_block(x, layer_params, final_ln, *, heads, dim_head,
                   batch_block=None, matmul_dtype=jnp.bfloat16):
    B, N, D = x.shape
    depth = len(layer_params)
    inner = heads * dim_head
    mlp_dim = layer_params[0][8].shape[-1]

    if batch_block is None:
        # >= 2 groups where possible so the "parallel" axis can shard across TensorCores (v7x)
        batch_block = B // 2 if (B % 2 == 0 and B >= 2) else B
    if (batch_block * N) % 8 != 0 and batch_block != B:
        batch_block = B                                    # fall back to a full-batch block
    assert B % batch_block == 0
    n_groups = B // batch_block
    bbN = batch_block * N

    vecs, b1, wqkv, wout, w1, w2 = pack_layer_params(layer_params, matmul_dtype)
    lnf_g = jnp.asarray(final_ln[0]).reshape(1, D).astype(jnp.float32)
    lnf_b = jnp.asarray(final_ln[1]).reshape(1, D).astype(jnp.float32)

    x2 = x.reshape(B * N, D).astype(jnp.float32)           # wrapper-side flatten (layout only)

    kernel = functools.partial(_fused_kernel, heads=heads, dim_head=dim_head,
                               batch_block=batch_block, seq=N, mm_dtype=matmul_dtype)

    def per_layer(arr):
        nd = arr.ndim
        return pl.BlockSpec((1,) + arr.shape[1:],
                            lambda g, d, _n=nd: (d,) + (0,) * (_n - 1))

    def const(arr):
        nd = arr.ndim
        return pl.BlockSpec(arr.shape, lambda g, d, _n=nd: (0,) * _n)

    w_bytes = jnp.dtype(matmul_dtype).itemsize
    vmem_limit = _vmem_limit_bytes(bbN, D, inner, mlp_dim, w_bytes)

    out = pl.pallas_call(
        kernel,
        out_shape=jax.ShapeDtypeStruct((B * N, D), jnp.float32),
        grid_spec=pltpu.PrefetchScalarGridSpec(
            num_scalar_prefetch=0,
            grid=(n_groups, depth),                        # depth innermost (sequential carry)
            in_specs=[
                pl.BlockSpec((bbN, D), lambda g, d: (g, 0)),    # x (per batch group)
                per_layer(vecs), per_layer(b1),
                per_layer(wqkv), per_layer(wout), per_layer(w1), per_layer(w2),
                const(lnf_g), const(lnf_b),
            ],
            out_specs=pl.BlockSpec((bbN, D), lambda g, d: (g, 0)),   # resident activation
            scratch_shapes=[
                pltpu.VMEM((bbN, 3 * inner), jnp.float32),   # flat QKV staging
                pltpu.VMEM((bbN, inner), jnp.float32),       # head-merge for out-projection
            ],
        ),
        compiler_params=pltpu.CompilerParams(
            dimension_semantics=("parallel", "arbitrary"),
            vmem_limit_bytes=vmem_limit,
        ),
    )(x2, vecs, b1, wqkv, wout, w1, w2, lnf_g, lnf_b)

    return out.reshape(B, N, D)


# ----------------------------- parameter init ---------------------------------

def init_params(key, dim, depth, heads, dim_head, mlp_dim):
    inner = heads * dim_head
    layer_params = []
    for _ in range(depth):
        key, *ks = jax.random.split(key, 6)
        ln1_g = jnp.ones((1, dim), jnp.float32)
        ln1_b = jnp.zeros((1, dim), jnp.float32)
        wqkv = jax.random.normal(ks[0], (dim, 3 * inner), jnp.float32) * 0.05
        wout = jax.random.normal(ks[1], (inner, dim), jnp.float32) * 0.05
        bout = jax.random.normal(ks[2], (1, dim), jnp.float32) * 0.02
        ln2_g = jnp.ones((1, dim), jnp.float32)
        ln2_b = jnp.zeros((1, dim), jnp.float32)
        w1 = jax.random.normal(ks[3], (dim, mlp_dim), jnp.float32) * 0.05
        b1 = jnp.zeros((1, mlp_dim), jnp.float32)
        w2 = jax.random.normal(ks[4], (mlp_dim, dim), jnp.float32) * 0.05
        b2 = jnp.zeros((1, dim), jnp.float32)
        layer_params.append((ln1_g, ln1_b, wqkv, wout, bout,
                             ln2_g, ln2_b, w1, b1, w2, b2))
    final_ln = (jnp.ones((1, dim), jnp.float32), jnp.zeros((1, dim), jnp.float32))
    return layer_params, final_ln


# ----------------------------- pure-JAX reference ------------------------------

def _ref_ln(x, g, b, eps=1e-5):
    mu = jnp.mean(x, axis=-1, keepdims=True)
    var = jnp.mean((x - mu) ** 2, axis=-1, keepdims=True)
    return (x - mu) / jnp.sqrt(var + eps) * g + b


def reference_block(x, layer_params, final_ln, *, heads, dim_head):
    B, N, D = x.shape
    inner = heads * dim_head
    scale = dim_head ** (-0.5)
    for (ln1_g, ln1_b, wqkv, wout, bout, ln2_g, ln2_b, w1, b1, w2, b2) in layer_params:
        xn = _ref_ln(x, ln1_g, ln1_b)
        qkv = xn @ wqkv
        q, k, v = jnp.split(qkv, 3, axis=-1)

        def heads_split(t):
            return t.reshape(B, N, heads, dim_head).transpose(0, 2, 1, 3)

        q, k, v = heads_split(q), heads_split(k), heads_split(v)
        dots = jnp.einsum('bhnd,bhmd->bhnm', q, k) * scale
        attn = jax.nn.softmax(dots, axis=-1)
        out = jnp.einsum('bhnm,bhmd->bhnd', attn, v)
        out = out.transpose(0, 2, 1, 3).reshape(B, N, inner)
        x = out @ wout + bout + x
        xn2 = _ref_ln(x, ln2_g, ln2_b)
        ff = jnp.maximum(xn2 @ w1 + b1, 0.0) @ w2 + b2
        x = ff + x
    return _ref_ln(x, final_ln[0], final_ln[1])


# ----------------------------- main --------------------------------------------

if __name__ == "__main__":
    B, N = 2, 8
    dim, depth, heads, dim_head, mlp_dim = 32, 2, 4, 8, 64

    key = jax.random.PRNGKey(0)
    kx, kp = jax.random.split(key)
    x = jax.random.normal(kx, (B, N, dim), jnp.float32)
    layer_params, final_ln = init_params(kp, dim, depth, heads, dim_head, mlp_dim)

    ref = jax.block_until_ready(
        reference_block(x, layer_params, final_ln, heads=heads, dim_head=dim_head))

    # exactness check: f32 matmul path, tight tolerance
    fwd32 = jax.jit(lambda xx, lp, fl: tdmsanet_block(
        xx, lp, fl, heads=heads, dim_head=dim_head, matmul_dtype=jnp.float32))
    out32 = jax.block_until_ready(fwd32(x, layer_params, final_ln))
    np.testing.assert_allclose(np.asarray(out32), np.asarray(ref), rtol=1e-3, atol=1e-3)

    # optimized path: bf16 weight streaming / MXU inputs, f32 accumulation
    fwd16 = jax.jit(lambda xx, lp, fl: tdmsanet_block(
        xx, lp, fl, heads=heads, dim_head=dim_head, matmul_dtype=jnp.bfloat16))
    out16 = jax.block_until_ready(fwd16(x, layer_params, final_ln))
    np.testing.assert_allclose(np.asarray(out16), np.asarray(ref), rtol=5e-2, atol=5e-2)

    print("KERNEL_OK")
</pallas_src>

<mosaic_0001>
module attributes {stable_mosaic.version = 11 : i64} {
  func.func @_fused_kernel(%arg0: i32, %arg1: i32, %arg2: memref<8x32xf32, #tpu.memory_space<vmem>>, %arg3: memref<1x8x32xf32, #tpu.memory_space<vmem>>, %arg4: memref<1x1x64xf32, #tpu.memory_space<vmem>>, %arg5: memref<1x32x96xf32, #tpu.memory_space<vmem>>, %arg6: memref<1x32x32xf32, #tpu.memory_space<vmem>>, %arg7: memref<1x32x64xf32, #tpu.memory_space<vmem>>, %arg8: memref<1x64x32xf32, #tpu.memory_space<vmem>>, %arg9: memref<1x32xf32, #tpu.memory_space<vmem>>, %arg10: memref<1x32xf32, #tpu.memory_space<vmem>>, %arg11: memref<8x32xf32, #tpu.memory_space<vmem>>, %arg12: memref<8x96xf32, #tpu.memory_space<vmem>>, %arg13: memref<8x32xf32, #tpu.memory_space<vmem>>) attributes {dimension_semantics = [#tpu.dimension_semantics<parallel>, #tpu.dimension_semantics<arbitrary>], iteration_bounds = array<i64: 2, 2>, scalar_prefetch = 0 : i64, scratch_operands = 2 : i64, tpu.core_type = #tpu.core_type<tc>, window_params = [{transform_indices = @transform_0, window_bounds = array<i64: 8, 32>}, {transform_indices = @transform_1, window_bounds = array<i64: 1, 8, 32>}, {transform_indices = @transform_2, window_bounds = array<i64: 1, 1, 64>}, {transform_indices = @transform_3, window_bounds = array<i64: 1, 32, 96>}, {transform_indices = @transform_4, window_bounds = array<i64: 1, 32, 32>}, {transform_indices = @transform_5, window_bounds = array<i64: 1, 32, 64>}, {transform_indices = @transform_6, window_bounds = array<i64: 1, 64, 32>}, {pipeline_mode = #tpu.pipeline_mode<synchronous>, transform_indices = @transform_7, window_bounds = array<i64: 1, 32>}, {pipeline_mode = #tpu.pipeline_mode<synchronous>, transform_indices = @transform_8, window_bounds = array<i64: 1, 32>}, {transform_indices = @transform_9, window_bounds = array<i64: 8, 32>}]} {
    %c0_i32 = arith.constant 0 : i32
    %0 = arith.cmpi eq, %arg1, %c0_i32 : i32
    %1 = arith.extui %0 : i1 to i32
    %c0_i32_0 = arith.constant 0 : i32
    %2 = arith.cmpi ne, %1, %c0_i32_0 : i32
    scf.if %2 {
      %c0_82 = arith.constant 0 : index
      %c0_83 = arith.constant 0 : index
      %154 = vector.load %arg2[%c0_82, %c0_83] : memref<8x32xf32, #tpu.memory_space<vmem>>, vector<8x32xf32>
      %c0_84 = arith.constant 0 : index
      %c0_85 = arith.constant 0 : index
      %155 = vector.load %arg11[%c0_84, %c0_85] : memref<8x32xf32, #tpu.memory_space<vmem>>, vector<8x32xf32>
      tpu.vector_store %arg11[%c0_84, %c0_85], %154 {strides = array<i32>} : memref<8x32xf32, #tpu.memory_space<vmem>>, vector<8x32xf32>,
    } else {
    }
    %c0 = arith.constant 0 : index
    %c0_1 = arith.constant 0 : index
    %3 = vector.load %arg11[%c0, %c0_1] : memref<8x32xf32, #tpu.memory_space<vmem>>, vector<8x32xf32>
    %c0_2 = arith.constant 0 : index
    %c0_3 = arith.constant 0 : index
    %c0_4 = arith.constant 0 : index
    %4 = vector.load %arg3[%c0_2, %c0_3, %c0_4] : memref<1x8x32xf32, #tpu.memory_space<vmem>>, vector<1x8x32xf32>
    %5 = vector.shape_cast %4 : vector<1x8x32xf32> to vector<8x32xf32>
    %6 = vector.extract_strided_slice %5 {offsets = [0, 0], sizes = [1, 32], strides = [1, 1]} : vector<8x32xf32> to vector<1x32xf32>
    %7 = vector.extract_strided_slice %5 {offsets = [1, 0], sizes = [1, 32], strides = [1, 1]} : vector<8x32xf32> to vector<1x32xf32>
    %8 = vector.extract_strided_slice %5 {offsets = [2, 0], sizes = [1, 32], strides = [1, 1]} : vector<8x32xf32> to vector<1x32xf32>
    %9 = vector.extract_strided_slice %5 {offsets = [3, 0], sizes = [1, 32], strides = [1, 1]} : vector<8x32xf32> to vector<1x32xf32>
    %10 = vector.extract_strided_slice %5 {offsets = [4, 0], sizes = [1, 32], strides = [1, 1]} : vector<8x32xf32> to vector<1x32xf32>
    %11 = vector.extract_strided_slice %5 {offsets = [5, 0], sizes = [1, 32], strides = [1, 1]} : vector<8x32xf32> to vector<1x32xf32>
    %c0_5 = arith.constant 0 : index
    %c0_6 = arith.constant 0 : index
    %c0_7 = arith.constant 0 : index
    %12 = vector.load %arg4[%c0_5, %c0_6, %c0_7] : memref<1x1x64xf32, #tpu.memory_space<vmem>>, vector<1x1x64xf32>
    %13 = vector.shape_cast %12 : vector<1x1x64xf32> to vector<1x64xf32>
    %cst = arith.constant dense<0.000000e+00> : vector<8xf32>
    %14 = vector.multi_reduction <add>, %3, %cst [1] : vector<8x32xf32> to vector<8xf32>
    %15 = vector.shape_cast %14 : vector<8xf32> to vector<8x1xf32>
    %cst_8 = arith.constant 3.200000e+01 : f32
    %16 = vector.broadcast %cst_8 : f32 to vector<8x1xf32>
    %17 = arith.divf %15, %16 : vector<8x1xf32>
    %18 = vector.broadcast %17 : vector<8x1xf32> to vector<8x32xf32>
    %19 = arith.subf %3, %18 : vector<8x32xf32>
    %20 = arith.mulf %19, %19 : vector<8x32xf32>
    %cst_9 = arith.constant dense<0.000000e+00> : vector<8xf32>
    %21 = vector.multi_reduction <add>, %20, %cst_9 [1] : vector<8x32xf32> to vector<8xf32>
    %22 = vector.shape_cast %21 : vector<8xf32> to vector<8x1xf32>
    %cst_10 = arith.constant 3.200000e+01 : f32
    %23 = vector.broadcast %cst_10 : f32 to vector<8x1xf32>
    %24 = arith.divf %22, %23 : vector<8x1xf32>
    %cst_11 = arith.constant 9.99999974E-6 : f32
    %25 = vector.broadcast %cst_11 : f32 to vector<8x1xf32>
    %26 = arith.addf %24, %25 : vector<8x1xf32>
    %27 = math.rsqrt %26 : vector<8x1xf32>
    %28 = vector.broadcast %27 : vector<8x1xf32> to vector<8x32xf32>
    %29 = arith.mulf %19, %28 : vector<8x32xf32>
    %30 = vector.broadcast %6 : vector<1x32xf32> to vector<8x32xf32>
    %31 = arith.mulf %29, %30 : vector<8x32xf32>
    %32 = vector.broadcast %7 : vector<1x32xf32> to vector<8x32xf32>
    %33 = arith.addf %31, %32 : vector<8x32xf32>
    %c0_12 = arith.constant 0 : index
    %c0_13 = arith.constant 0 : index
    %c0_14 = arith.constant 0 : index
    %34 = vector.load %arg5[%c0_12, %c0_13, %c0_14] : memref<1x32x96xf32, #tpu.memory_space<vmem>>, vector<1x32x96xf32>
    %35 = vector.shape_cast %34 : vector<1x32x96xf32> to vector<32x96xf32>
    %cst_15 = arith.constant dense<0.000000e+00> : vector<8x96xf32>
    %36 = tpu.matmul %33, %35, %cst_15 {dimension_numbers = #tpu.dot_dimension_numbers<[1], [0], [0], [1], [0, 0, 1, 1], [], []>} : vector<8x32xf32>, vector<32x96xf32>, vector<8x96xf32> -> vector<8x96xf32>
    %c0_16 = arith.constant 0 : index
    %c0_17 = arith.constant 0 : index
    %37 = vector.load %arg12[%c0_16, %c0_17] : memref<8x96xf32, #tpu.memory_space<vmem>>, vector<8x96xf32>
    tpu.vector_store %arg12[%c0_16, %c0_17], %36 {strides = array<i32>} : memref<8x96xf32, #tpu.memory_space<vmem>>, vector<8x96xf32>,
    %c0_18 = arith.constant 0 : index
    %c0_19 = arith.constant 0 : index
    %38 = vector.load %arg12[%c0_18, %c0_19] : memref<8x96xf32, #tpu.memory_space<vmem>>, vector<8x8xf32>
    %cst_20 = arith.constant 0.353553385 : f32
    %39 = vector.broadcast %cst_20 : f32 to vector<8x8xf32>
    %40 = arith.mulf %38, %39 : vector<8x8xf32>
    %c0_21 = arith.constant 0 : index
    %c32 = arith.constant 32 : index
    %41 = vector.load %arg12[%c0_21, %c32] : memref<8x96xf32, #tpu.memory_space<vmem>>, vector<8x8xf32>
    %c0_22 = arith.constant 0 : index
    %c64 = arith.constant 64 : index
    %42 = vector.load %arg12[%c0_22, %c64] : memref<8x96xf32, #tpu.memory_space<vmem>>, vector<8x8xf32>
    "tpu.trace_start"() <{level = 10 : i32, message = "nd,md->nm"}> : () -> ()
    %cst_23 = arith.constant dense<0.000000e+00> : vector<8x8xf32>
    %43 = tpu.matmul %40, %41, %cst_23 {dimension_numbers = #tpu.dot_dimension_numbers<[1], [1], [0], [0], [0, 0, 1, 0], [], []>} : vector<8x8xf32>, vector<8x8xf32>, vector<8x8xf32> -> vector<8x8xf32>
    "tpu.trace_stop"() : () -> ()
    %cst_24 = arith.constant dense<0xFF800000> : vector<8xf32>
    %44 = vector.multi_reduction <maximumf>, %43, %cst_24 [1] : vector<8x8xf32> to vector<8xf32>
    %45 = vector.shape_cast %44 : vector<8xf32> to vector<8x1xf32>
    %46 = vector.broadcast %45 : vector<8x1xf32> to vector<8x8xf32>
    %47 = arith.subf %43, %46 : vector<8x8xf32>
    %48 = math.exp %47 : vector<8x8xf32>
    %cst_25 = arith.constant dense<0.000000e+00> : vector<8xf32>
    %49 = vector.multi_reduction <add>, %48, %cst_25 [1] : vector<8x8xf32> to vector<8xf32>
    %50 = vector.shape_cast %49 : vector<8xf32> to vector<8x1xf32>
    %51 = tpu.reciprocal %50 {approx = true} : vector<8x1xf32> -> vector<8x1xf32>
    %52 = vector.broadcast %51 : vector<8x1xf32> to vector<8x8xf32>
    %53 = arith.mulf %48, %52 : vector<8x8xf32>
    %cst_26 = arith.constant dense<0.000000e+00> : vector<8x8xf32>
    %54 = tpu.matmul %53, %42, %cst_26 {dimension_numbers = #tpu.dot_dimension_numbers<[1], [0], [0], [1], [0, 0, 1, 1], [], []>} : vector<8x8xf32>, vector<8x8xf32>, vector<8x8xf32> -> vector<8x8xf32>
    %c0_27 = arith.constant 0 : index
    %c0_28 = arith.constant 0 : index
    %55 = vector.load %arg13[%c0_27, %c0_28] : memref<8x32xf32, #tpu.memory_space<vmem>>, vector<8x8xf32>
    tpu.vector_store %arg13[%c0_27, %c0_28], %54 {strides = array<i32>} : memref<8x32xf32, #tpu.memory_space<vmem>>, vector<8x8xf32>,
    %c0_29 = arith.constant 0 : index
    %c8 = arith.constant 8 : index
    %56 = vector.load %arg12[%c0_29, %c8] : memref<8x96xf32, #tpu.memory_space<vmem>>, vector<8x8xf32>
    %cst_30 = arith.constant 0.353553385 : f32
    %57 = vector.broadcast %cst_30 : f32 to vector<8x8xf32>
    %58 = arith.mulf %56, %57 : vector<8x8xf32>
    %c0_31 = arith.constant 0 : index
    %c40 = arith.constant 40 : index
    %59 = vector.load %arg12[%c0_31, %c40] : memref<8x96xf32, #tpu.memory_space<vmem>>, vector<8x8xf32>
    %c0_32 = arith.constant 0 : index
    %c72 = arith.constant 72 : index
    %60 = vector.load %arg12[%c0_32, %c72] : memref<8x96xf32, #tpu.memory_space<vmem>>, vector<8x8xf32>
    "tpu.trace_start"() <{level = 10 : i32, message = "nd,md->nm"}> : () -> ()
    %cst_33 = arith.constant dense<0.000000e+00> : vector<8x8xf32>
    %61 = tpu.matmul %58, %59, %cst_33 {dimension_numbers = #tpu.dot_dimension_numbers<[1], [1], [0], [0], [0, 0, 1, 0], [], []>} : vector<8x8xf32>, vector<8x8xf32>, vector<8x8xf32> -> vector<8x8xf32>
    "tpu.trace_stop"() : () -> ()
    %cst_34 = arith.constant dense<0xFF800000> : vector<8xf32>
    %62 = vector.multi_reduction <maximumf>, %61, %cst_34 [1] : vector<8x8xf32> to vector<8xf32>
    %63 = vector.shape_cast %62 : vector<8xf32> to vector<8x1xf32>
    %64 = vector.broadcast %63 : vector<8x1xf32> to vector<8x8xf32>
    %65 = arith.subf %61, %64 : vector<8x8xf32>
    %66 = math.exp %65 : vector<8x8xf32>
    %cst_35 = arith.constant dense<0.000000e+00> : vector<8xf32>
    %67 = vector.multi_reduction <add>, %66, %cst_35 [1] : vector<8x8xf32> to vector<8xf32>
    %68 = vector.shape_cast %67 : vector<8xf32> to vector<8x1xf32>
    %69 = tpu.reciprocal %68 {approx = true} : vector<8x1xf32> -> vector<8x1xf32>
    %70 = vector.broadcast %69 : vector<8x1xf32> to vector<8x8xf32>
    %71 = arith.mulf %66, %70 : vector<8x8xf32>
    %cst_36 = arith.constant dense<0.000000e+00> : vector<8x8xf32>
    %72 = tpu.matmul %71, %60, %cst_36 {dimension_numbers = #tpu.dot_dimension_numbers<[1], [0], [0], [1], [0, 0, 1, 1], [], []>} : vector<8x8xf32>, vector<8x8xf32>, vector<8x8xf32> -> vector<8x8xf32>
    %c0_37 = arith.constant 0 : index
    %c8_38 = arith.constant 8 : index
    %73 = vector.load %arg13[%c0_37, %c8_38] : memref<8x32xf32, #tpu.memory_space<vmem>>, vector<8x8xf32>
    tpu.vector_store %arg13[%c0_37, %c8_38], %72 {strides = array<i32>} : memref<8x32xf32, #tpu.memory_space<vmem>>, vector<8x8xf32>,
    %c0_39 = arith.constant 0 : index
    %c16 = arith.constant 16 : index
    %74 = vector.load %arg12[%c0_39, %c16] : memref<8x96xf32, #tpu.memory_space<vmem>>, vector<8x8xf32>
    %cst_40 = arith.constant 0.353553385 : f32
    %75 = vector.broadcast %cst_40 : f32 to vector<8x8xf32>
    %76 = arith.mulf %74, %75 : vector<8x8xf32>
    %c0_41 = arith.constant 0 : index
    %c48 = arith.constant 48 : index
    %77 = vector.load %arg12[%c0_41, %c48] : memref<8x96xf32, #tpu.memory_space<vmem>>, vector<8x8xf32>
    %c0_42 = arith.constant 0 : index
    %c80 = arith.constant 80 : index
    %78 = vector.load %arg12[%c0_42, %c80] : memref<8x96xf32, #tpu.memory_space<vmem>>, vector<8x8xf32>
    "tpu.trace_start"() <{level = 10 : i32, message = "nd,md->nm"}> : () -> ()
    %cst_43 = arith.constant dense<0.000000e+00> : vector<8x8xf32>
    %79 = tpu.matmul %76, %77, %cst_43 {dimension_numbers = #tpu.dot_dimension_numbers<[1], [1], [0], [0], [0, 0, 1, 0], [], []>} : vector<8x8xf32>, vector<8x8xf32>, vector<8x8xf32> -> vector<8x8xf32>
    "tpu.trace_stop"() : () -> ()
    %cst_44 = arith.constant dense<0xFF800000> : vector<8xf32>
    %80 = vector.multi_reduction <maximumf>, %79, %cst_44 [1] : vector<8x8xf32> to vector<8xf32>
    %81 = vector.shape_cast %80 : vector<8xf32> to vector<8x1xf32>
    %82 = vector.broadcast %81 : vector<8x1xf32> to vector<8x8xf32>
    %83 = arith.subf %79, %82 : vector<8x8xf32>
    %84 = math.exp %83 : vector<8x8xf32>
    %cst_45 = arith.constant dense<0.000000e+00> : vector<8xf32>
    %85 = vector.multi_reduction <add>, %84, %cst_45 [1] : vector<8x8xf32> to vector<8xf32>
    %86 = vector.shape_cast %85 : vector<8xf32> to vector<8x1xf32>
    %87 = tpu.reciprocal %86 {approx = true} : vector<8x1xf32> -> vector<8x1xf32>
    %88 = vector.broadcast %87 : vector<8x1xf32> to vector<8x8xf32>
    %89 = arith.mulf %84, %88 : vector<8x8xf32>
    %cst_46 = arith.constant dense<0.000000e+00> : vector<8x8xf32>
    %90 = tpu.matmul %89, %78, %cst_46 {dimension_numbers = #tpu.dot_dimension_numbers<[1], [0], [0], [1], [0, 0, 1, 1], [], []>} : vector<8x8xf32>, vector<8x8xf32>, vector<8x8xf32> -> vector<8x8xf32>
    %c0_47 = arith.constant 0 : index
    %c16_48 = arith.constant 16 : index
    %91 = vector.load %arg13[%c0_47, %c16_48] : memref<8x32xf32, #tpu.memory_space<vmem>>, vector<8x8xf32>
    tpu.vector_store %arg13[%c0_47, %c16_48], %90 {strides = array<i32>} : memref<8x32xf32, #tpu.memory_space<vmem>>, vector<8x8xf32>,
    %c0_49 = arith.constant 0 : index
    %c24 = arith.constant 24 : index
    %92 = vector.load %arg12[%c0_49, %c24] : memref<8x96xf32, #tpu.memory_space<vmem>>, vector<8x8xf32>
    %cst_50 = arith.constant 0.353553385 : f32
    %93 = vector.broadcast %cst_50 : f32 to vector<8x8xf32>
    %94 = arith.mulf %92, %93 : vector<8x8xf32>
    %c0_51 = arith.constant 0 : index
    %c56 = arith.constant 56 : index
    %95 = vector.load %arg12[%c0_51, %c56] : memref<8x96xf32, #tpu.memory_space<vmem>>, vector<8x8xf32>
    %c0_52 = arith.constant 0 : index
    %c88 = arith.constant 88 : index
    %96 = vector.load %arg12[%c0_52, %c88] : memref<8x96xf32, #tpu.memory_space<vmem>>, vector<8x8xf32>
    "tpu.trace_start"() <{level = 10 : i32, message = "nd,md->nm"}> : () -> ()
    %cst_53 = arith.constant dense<0.000000e+00> : vector<8x8xf32>
    %97 = tpu.matmul %94, %95, %cst_53 {dimension_numbers = #tpu.dot_dimension_numbers<[1], [1], [0], [0], [0, 0, 1, 0], [], []>} : vector<8x8xf32>, vector<8x8xf32>, vector<8x8xf32> -> vector<8x8xf32>
    "tpu.trace_stop"() : () -> ()
    %cst_54 = arith.constant dense<0xFF800000> : vector<8xf32>
    %98 = vector.multi_reduction <maximumf>, %97, %cst_54 [1] : vector<8x8xf32> to vector<8xf32>
    %99 = vector.shape_cast %98 : vector<8xf32> to vector<8x1xf32>
    %100 = vector.broadcast %99 : vector<8x1xf32> to vector<8x8xf32>
    %101 = arith.subf %97, %100 : vector<8x8xf32>
    %102 = math.exp %101 : vector<8x8xf32>
    %cst_55 = arith.constant dense<0.000000e+00> : vector<8xf32>
    %103 = vector.multi_reduction <add>, %102, %cst_55 [1] : vector<8x8xf32> to vector<8xf32>
    %104 = vector.shape_cast %103 : vector<8xf32> to vector<8x1xf32>
    %105 = tpu.reciprocal %104 {approx = true} : vector<8x1xf32> -> vector<8x1xf32>
    %106 = vector.broadcast %105 : vector<8x1xf32> to vector<8x8xf32>
    %107 = arith.mulf %102, %106 : vector<8x8xf32>
    %cst_56 = arith.constant dense<0.000000e+00> : vector<8x8xf32>
    %108 = tpu.matmul %107, %96, %cst_56 {dimension_numbers = #tpu.dot_dimension_numbers<[1], [0], [0], [1], [0, 0, 1, 1], [], []>} : vector<8x8xf32>, vector<8x8xf32>, vector<8x8xf32> -> vector<8x8xf32>
    %c0_57 = arith.constant 0 : index
    %c24_58 = arith.constant 24 : index
    %109 = vector.load %arg13[%c0_57, %c24_58] : memref<8x32xf32, #tpu.memory_space<vmem>>, vector<8x8xf32>
    tpu.vector_store %arg13[%c0_57, %c24_58], %108 {strides = array<i32>} : memref<8x32xf32, #tpu.memory_space<vmem>>, vector<8x8xf32>,
    %c0_59 = arith.constant 0 : index
    %c0_60 = arith.constant 0 : index
    %110 = vector.load %arg13[%c0_59, %c0_60] : memref<8x32xf32, #tpu.memory_space<vmem>>, vector<8x32xf32>
    %c0_61 = arith.constant 0 : index
    %c0_62 = arith.constant 0 : index
    %c0_63 = arith.constant 0 : index
    %111 = vector.load %arg6[%c0_61, %c0_62, %c0_63] : memref<1x32x32xf32, #tpu.memory_space<vmem>>, vector<1x32x32xf32>
    %112 = vector.shape_cast %111 : vector<1x32x32xf32> to vector<32x32xf32>
    %cst_64 = arith.constant dense<0.000000e+00> : vector<8x32xf32>
    %113 = tpu.matmul %110, %112, %cst_64 {dimension_numbers = #tpu.dot_dimension_numbers<[1], [0], [0], [1], [0, 0, 1, 1], [], []>} : vector<8x32xf32>, vector<32x32xf32>, vector<8x32xf32> -> vector<8x32xf32>
    %114 = vector.broadcast %8 : vector<1x32xf32> to vector<8x32xf32>
    %115 = arith.addf %113, %114 : vector<8x32xf32>
    %116 = arith.addf %3, %115 : vector<8x32xf32>
    %cst_65 = arith.constant dense<0.000000e+00> : vector<8xf32>
    %117 = vector.multi_reduction <add>, %116, %cst_65 [1] : vector<8x32xf32> to vector<8xf32>
    %118 = vector.shape_cast %117 : vector<8xf32> to vector<8x1xf32>
    %cst_66 = arith.constant 3.200000e+01 : f32
    %119 = vector.broadcast %cst_66 : f32 to vector<8x1xf32>
    %120 = arith.divf %118, %119 : vector<8x1xf32>
    %121 = vector.broadcast %120 : vector<8x1xf32> to vector<8x32xf32>
    %122 = arith.subf %116, %121 : vector<8x32xf32>
    %123 = arith.mulf %122, %122 : vector<8x32xf32>
    %cst_67 = arith.constant dense<0.000000e+00> : vector<8xf32>
    %124 = vector.multi_reduction <add>, %123, %cst_67 [1] : vector<8x32xf32> to vector<8xf32>
    %125 = vector.shape_cast %124 : vector<8xf32> to vector<8x1xf32>
    %cst_68 = arith.constant 3.200000e+01 : f32
    %126 = vector.broadcast %cst_68 : f32 to vector<8x1xf32>
    %127 = arith.divf %125, %126 : vector<8x1xf32>
    %cst_69 = arith.constant 9.99999974E-6 : f32
    %128 = vector.broadcast %cst_69 : f32 to vector<8x1xf32>
    %129 = arith.addf %127, %128 : vector<8x1xf32>
    %130 = math.rsqrt %129 : vector<8x1xf32>
    %131 = vector.broadcast %130 : vector<8x1xf32> to vector<8x32xf32>
    %132 = arith.mulf %122, %131 : vector<8x32xf32>
    %133 = vector.broadcast %9 : vector<1x32xf32> to vector<8x32xf32>
    %134 = arith.mulf %132, %133 : vector<8x32xf32>
    %135 = vector.broadcast %10 : vector<1x32xf32> to vector<8x32xf32>
    %136 = arith.addf %134, %135 : vector<8x32xf32>
    %c0_70 = arith.constant 0 : index
    %c0_71 = arith.constant 0 : index
    %c0_72 = arith.constant 0 : index
    %137 = vector.load %arg7[%c0_70, %c0_71, %c0_72] : memref<1x32x64xf32, #tpu.memory_space<vmem>>, vector<1x32x64xf32>
    %138 = vector.shape_cast %137 : vector<1x32x64xf32> to vector<32x64xf32>
    %cst_73 = arith.constant dense<0.000000e+00> : vector<8x64xf32>
    %139 = tpu.matmul %136, %138, %cst_73 {dimension_numbers = #tpu.dot_dimension_numbers<[1], [0], [0], [1], [0, 0, 1, 1], [], []>} : vector<8x32xf32>, vector<32x64xf32>, vector<8x64xf32> -> vector<8x64xf32>
    %140 = vector.broadcast %13 : vector<1x64xf32> to vector<8x64xf32>
    %141 = arith.addf %139, %140 : vector<8x64xf32>
    %cst_74 = arith.constant 0.000000e+00 : f32
    %142 = vector.broadcast %cst_74 : f32 to vector<8x64xf32>
    %143 = arith.maximumf %141, %142 : vector<8x64xf32>
    %c0_75 = arith.constant 0 : index
    %c0_76 = arith.constant 0 : index
    %c0_77 = arith.constant 0 : index
    %144 = vector.load %arg8[%c0_75, %c0_76, %c0_77] : memref<1x64x32xf32, #tpu.memory_space<vmem>>, vector<1x64x32xf32>
    %145 = vector.shape_cast %144 : vector<1x64x32xf32> to vector<64x32xf32>
    %cst_78 = arith.constant dense<0.000000e+00> : vector<8x32xf32>
    %146 = tpu.matmul %143, %145, %cst_78 {dimension_numbers = #tpu.dot_dimension_numbers<[1], [0], [0], [1], [0, 0, 1, 1], [], []>} : vector<8x64xf32>, vector<64x32xf32>, vector<8x32xf32> -> vector<8x32xf32>
    %147 = arith.addf %116, %146 : vector<8x32xf32>
    %148 = vector.broadcast %11 : vector<1x32xf32> to vector<8x32xf32>
    %149 = arith.addf %147, %148 : vector<8x32xf32>
    %c0_79 = arith.constant 0 : index
    %c0_80 = arith.constant 0 : index
    %150 = vector.load %arg11[%c0_79, %c0_80] : memref<8x32xf32, #tpu.memory_space<vmem>>, vector<8x32xf32>
    tpu.vector_store %arg11[%c0_79, %c0_80], %149 {strides = array<i32>} : memref<8x32xf32, #tpu.memory_space<vmem>>, vector<8x32xf32>,
    %c1_i32 = arith.constant 1 : i32
    %151 = arith.cmpi eq, %arg1, %c1_i32 : i32
    %152 = arith.extui %151 : i1 to i32
    %c0_i32_81 = arith.constant 0 : i32
    %153 = arith.cmpi ne, %152, %c0_i32_81 : i32
    scf.if %153 {
      %c0_82 = arith.constant 0 : index
      %c0_83 = arith.constant 0 : index
      %154 = vector.load %arg9[%c0_82, %c0_83] : memref<1x32xf32, #tpu.memory_space<vmem>>, vector<1x32xf32>
      %c0_84 = arith.constant 0 : index
      %c0_85 = arith.constant 0 : index
      %155 = vector.load %arg10[%c0_84, %c0_85] : memref<1x32xf32, #tpu.memory_space<vmem>>, vector<1x32xf32>
      %cst_86 = arith.constant dense<0.000000e+00> : vector<8xf32>
      %156 = vector.multi_reduction <add>, %149, %cst_86 [1] : vector<8x32xf32> to vector<8xf32>
      %157 = vector.shape_cast %156 : vector<8xf32> to vector<8x1xf32>
      %cst_87 = arith.constant 3.200000e+01 : f32
      %158 = vector.broadcast %cst_87 : f32 to vector<8x1xf32>
      %159 = arith.divf %157, %158 : vector<8x1xf32>
      %160 = vector.broadcast %159 : vector<8x1xf32> to vector<8x32xf32>
      %161 = arith.subf %149, %160 : vector<8x32xf32>
      %162 = arith.mulf %161, %161 : vector<8x32xf32>
      %cst_88 = arith.constant dense<0.000000e+00> : vector<8xf32>
      %163 = vector.multi_reduction <add>, %162, %cst_88 [1] : vector<8x32xf32> to vector<8xf32>
      %164 = vector.shape_cast %163 : vector<8xf32> to vector<8x1xf32>
      %cst_89 = arith.constant 3.200000e+01 : f32
      %165 = vector.broadcast %cst_89 : f32 to vector<8x1xf32>
      %166 = arith.divf %164, %165 : vector<8x1xf32>
      %cst_90 = arith.constant 9.99999974E-6 : f32
      %167 = vector.broadcast %cst_90 : f32 to vector<8x1xf32>
      %168 = arith.addf %166, %167 : vector<8x1xf32>
      %169 = math.rsqrt %168 : vector<8x1xf32>
      %170 = vector.broadcast %169 : vector<8x1xf32> to vector<8x32xf32>
      %171 = arith.mulf %161, %170 : vector<8x32xf32>
      %172 = vector.broadcast %154 : vector<1x32xf32> to vector<8x32xf32>
      %173 = arith.mulf %171, %172 : vector<8x32xf32>
      %174 = vector.broadcast %155 : vector<1x32xf32> to vector<8x32xf32>
      %175 = arith.addf %173, %174 : vector<8x32xf32>
      %c0_91 = arith.constant 0 : index
      %c0_92 = arith.constant 0 : index
      %176 = vector.load %arg11[%c0_91, %c0_92] : memref<8x32xf32, #tpu.memory_space<vmem>>, vector<8x32xf32>
      tpu.vector_store %arg11[%c0_91, %c0_92], %175 {strides = array<i32>} : memref<8x32xf32, #tpu.memory_space<vmem>>, vector<8x32xf32>,
    } else {
    }
    return
  }
  func.func @transform_0(%arg0: i32, %arg1: i32) -> (i32, i32) {
    %c0_i32 = arith.constant 0 : i32
    %c0_i32_0 = arith.constant 0 : i32
    return %arg0, %c0_i32 : i32, i32
  }
  func.func @transform_1(%arg0: i32, %arg1: i32) -> (i32, i32, i32) {
    %c0_i32 = arith.constant 0 : i32
    %c0_i32_0 = arith.constant 0 : i32
    %c0_i32_1 = arith.constant 0 : i32
    return %arg1, %c0_i32, %c0_i32_0 : i32, i32, i32
  }
  func.func @transform_2(%arg0: i32, %arg1: i32) -> (i32, i32, i32) {
    %c0_i32 = arith.constant 0 : i32
    %c0_i32_0 = arith.constant 0 : i32
    %c0_i32_1 = arith.constant 0 : i32
    return %arg1, %c0_i32, %c0_i32_0 : i32, i32, i32
  }
  func.func @transform_3(%arg0: i32, %arg1: i32) -> (i32, i32, i32) {
    %c0_i32 = arith.constant 0 : i32
    %c0_i32_0 = arith.constant 0 : i32
    %c0_i32_1 = arith.constant 0 : i32
    return %arg1, %c0_i32, %c0_i32_0 : i32, i32, i32
  }
  func.func @transform_4(%arg0: i32, %arg1: i32) -> (i32, i32, i32) {
    %c0_i32 = arith.constant 0 : i32
    %c0_i32_0 = arith.constant 0 : i32
    %c0_i32_1 = arith.constant 0 : i32
    return %arg1, %c0_i32, %c0_i32_0 : i32, i32, i32
  }
  func.func @transform_5(%arg0: i32, %arg1: i32) -> (i32, i32, i32) {
    %c0_i32 = arith.constant 0 : i32
    %c0_i32_0 = arith.constant 0 : i32
    %c0_i32_1 = arith.constant 0 : i32
    return %arg1, %c0_i32, %c0_i32_0 : i32, i32, i32
  }
  func.func @transform_6(%arg0: i32, %arg1: i32) -> (i32, i32, i32) {
    %c0_i32 = arith.constant 0 : i32
    %c0_i32_0 = arith.constant 0 : i32
    %c0_i32_1 = arith.constant 0 : i32
    return %arg1, %c0_i32, %c0_i32_0 : i32, i32, i32
  }
  func.func @transform_7(%arg0: i32, %arg1: i32) -> (i32, i32) {
    %c0_i32 = arith.constant 0 : i32
    %c0_i32_0 = arith.constant 0 : i32
    %c0_i32_1 = arith.constant 0 : i32
    return %c0_i32, %c0_i32_0 : i32, i32
  }
  func.func @transform_8(%arg0: i32, %arg1: i32) -> (i32, i32) {
    %c0_i32 = arith.constant 0 : i32
    %c0_i32_0 = arith.constant 0 : i32
    %c0_i32_1 = arith.constant 0 : i32
    return %c0_i32, %c0_i32_0 : i32, i32
  }
  func.func @transform_9(%arg0: i32, %arg1: i32) -> (i32, i32) {
    %c0_i32 = arith.constant 0 : i32
    %c0_i32_0 = arith.constant 0 : i32
    return %arg0, %c0_i32 : i32, i32
  }
}

</mosaic_0001>

<bundles_post_ra>
// kernel: _lambda_.1
= control target key start
LH: loop header
LB: loop body
LE: loop exit
PB: predicated region body
PF: predicated region fallthrough
CT: control target
= control target key end

     0   :  { %s2493_s0 = inlined_call_operand.vmem [shape: f32[16,32], index: 0, kind: input, shape index: {}]   ;;  %s2494_s1 = inlined_call_operand.vmem [shape: f32[2,8,32], index: 1, kind: input, shape index: {}]   ;;  %s2495_s2 = inlined_call_operand.vmem [shape: f32[2,1,64], index: 2, kind: input, shape index: {}]   ;;  %s2496_s3 = inlined_call_operand.vmem [shape: f32[2,32,96], index: 3, kind: input, shape index: {}]   ;;  %s2497_s4 = inlined_call_operand.vmem [shape: f32[2,32,32], index: 4, kind: input, shape index: {}]   ;;  %s2498_s5 = inlined_call_operand.vmem [shape: f32[2,32,64], index: 5, kind: input, shape index: {}]   ;;  %s2499_s6 = inlined_call_operand.vmem [shape: f32[2,64,32], index: 6, kind: input, shape index: {}]   ;;  %s2500_s7 = inlined_call_operand.vmem [shape: f32[1,32], index: 7, kind: input, shape index: {}]   ;;  %s2501_s8 = inlined_call_operand.vmem [shape: f32[1,32], index: 8, kind: input, shape index: {}]   ;;  %s2502_s9 = inlined_call_operand.hbm [shape: f32[16,32], index: 9, kind: output, shape index: {}]  }
   0x1   :  { %2515 = sst [smem:[#allocation17_spill]] %s2502_s9 }
   0x2   :  { %14 = vsyncpa [#allocation5], 0 }
   0x3   :  { %16 = vsyncpa [#allocation5 + $0x1], 0  ;;  %s2172_s30 = smov 0   ;;  %s2174_s10 = smov 0  }
   0x4   :  { %s2176_s11 = smov 0   ;;  %s2178_s12 = smov 0  }
   0x5   :  { %s2180_s13 = smov 0   ;;  %s2182_s14 = smov 0  }
   0x6   :  { %s2184_s15 = smov 0   ;;  %s2186_s16 = smov 0  }
   0x7 LB: > { %2516 = sst [smem:[#allocation7_spill]] %s2075_s30  ;;  %s1725_s17 = sadd.s32 4294967295, %s2103_s16   ;;  %s2103_s16 = sphi %s2186_s16, %s22_s16   ;;  %s2099_s15 = sphi %s2184_s15, %s2540_s15   ;;  %s2095_s14 = sphi %s2182_s14, %s2539_s14   ;;  %s2091_s13 = sphi %s2180_s13, %s2538_s13   ;;  %s2087_s12 = sphi %s2178_s12, %s2537_s12   ;;  %s2083_s11 = sphi %s2176_s11, %s2536_s11   ;;  %s2079_s10 = sphi %s2174_s10, %s2542_s10   ;;  %s2075_s30 = sphi %s2172_s30, %s2541_s30  }
   0x8   : > { %2517 = sst [smem:[#allocation8_spill]] %s2083_s11  ;;  %s1726_s18 = sadd.s32 4294967294, %s2103_s16  }
   0x9   : > { %2518 = sst [smem:[#allocation9_spill]] %s2095_s14  ;;  %s31_s19 = sadd.s32 1, %s2095_s14 }
   0xa   : > { %2519 = sst [smem:[#allocation10_spill]] %s2099_s15  ;;  %p32_p0 = scmp.ge.s32.totalorder %s31_s19, 2 }
   0xb   : > { %2520 = sst [smem:[#allocation11_spill]] %s2103_s16  ;;  %s34_s20 = sadd.s32 1, %s2099_s15 }
   0xc   : > { %p275_p1 = scmp.ne.s32.totalorder %s2083_s11, %s2079_s10  ;;  %p276_p2 = scmp.eq.s32.totalorder %s1725_s17, 3 }
   0xd   : > { %s2544_s19 = smov (%p32_p0, %s31_s19), 0  ;;  %s2546_s20 = smov (!%p32_p0, %s34_s20), %s2099_s15 }
   0xe   : > { %2521 = sst [smem:[#allocation12_spill]] %s2544_s19  ;;  %p2221_p3 = por %p276_p2, %p275_p1 }
   0xf   : > { %p281_p4 = scmp.ne.s32.totalorder %s2079_s10, %s2075_s30  ;;  %p36_p5 = scmp.ge.s32.totalorder %s2546_s20, 2 }
  0x10   : > { %s2522_s21 = scalar_select %p2221_p3, 1, 0 }
  0x11   : > { %p282_p6 = scmp.eq.s32.totalorder %s1726_s18, 3  ;;  %p1729_p7 = scmp.ge.s32.totalorder %s2103_s16, 1 }
  0x12   : > { %2523 = sst [smem:[#allocation13_spill]] %s2522_s21  ;;  %p358_p8 = scmp.lt.s32.totalorder %s2103_s16, 5 }
  0x13   : > { %s2548_s20 = smov (%p36_p5, %s2546_s20), 0  ;;  %p2231_p9 = por %p282_p6, %p281_p4 }
  0x14   : > { %2524 = sst [smem:[#allocation14_spill]] %s2548_s20  ;;  %p359_p10 = pnand %p1729_p7, %p358_p8 }
  0x15   : > { %s2525_s22 = scalar_select %p2231_p9, 1, 0 }
  0x16   : > { %s262_s23 = ssub.s32 %s2099_s15, %s2548_s20  ;;  %s265_s24 = sadd.s32 1, %s2083_s11 }
  0x17   : > { %2526 = sst [smem:[#allocation15_spill]] %s2525_s22  ;;  %p263_p11 = scmp.eq.s32.totalorder %s262_s23, 0 }
  0x18   : > { %362 = sbr.rel (%p359_p10) target bundleno = 2749 (0xabd), region = 56  ;;  %s2506_s26 = sand.u32 (!%p359_p10), 1, %s2079_s10  }
  0x19   : > { %s2239_s25 = scalar_select %p263_p11, %s2083_s11, %s265_s24  }
  0x1a   : > { %p420_p12 = scmp.lt.s32.totalorder (!%p359_p10), %s2091_s13, 1  ;;  %s1730_s27 = sshll.u32 (!%p359_p10), %s2506_s26, 3 }
  0x1b   : > { %2527 = sst [smem:[#allocation16_spill]] %s2239_s25  ;;  %p424_p13 = scmp.lt.s32.totalorder (!%p359_p10), %s2087_s12, 1 }
  0x1c   : > { %s2285_s11 = scalar_lea.vmem (!%p359_p10), [#allocation4], %s1730_s27  ;;  %p1741_p0 = scmp.ne.s32.totalorder (!%p359_p10), %s2087_s12, 0 }
  0x1d   : > { %s421_s28 = scalar_select %p420_p12, %s2091_s13, 1 }
  0x1e   : > { %s2248_s29 = scalar_select %p424_p13, %s2087_s12, 1 }
  0x1f   : > { %s1731_s17 = sshll.u32 %s421_s28, 3 }
  0x20   : > { %s423_s24 = scalar_lea.vmem %s2493_s0, %s1731_s17  ;;  %s1732_s20 = sshll.u32 %s2248_s29, 3 }
  0x21   : > { %s2257_s14 = scalar_lea.vmem %s2494_s1, %s1732_s20  ;;  %s1766_s22 = sshll.u32 %s2248_s29, 5 }
  0x22   : > { %s1769_s30 = sshll.u32 %s2248_s29, 6  ;;  %s2268_s28 = scalar_lea.vmem %s2496_s3, %s1766_s22 }
  0x23   : > { %s2273_s17 = scalar_lea.vmem %s2497_s4, %s1766_s22  ;;  %s2278_s19 = scalar_lea.vmem %s2498_s5, %s1766_s22 }
  0x24   : > { %s2283_s26 = scalar_lea.vmem %s2499_s6, %s1769_s30  ;;  %454 = sbr.rel (%p1741_p0) target bundleno = 43 (0x2b), region = 60 }
  0x29   : > { %v455_v0 = vld [vmem:[%s423_s24] sm:$0xff]  ;;  %vm456_vm0 = vcmask 261120  }
  0x2a   : > { %457 = vst.msk [vmem:[%s2285_s11] sm:$0xff] %vm456_vm0, %v455_v0 }
  0x2b PF: > { %vm461_vm1 = vcmask 261120   ;;  %v489_v8 = vld [vmem:[%s2268_s28 + $0x18] sm:$0xff]  ;;  %v2105_v9 = vmov 0.0   ;;  %v488_v10 = vld [vmem:[%s2268_s28 + $0x10] sm:$0xff]  ;;  %vm2106_vm2 = vmmov 0   ;;  %v487_v11 = vld [vmem:[%s2268_s28 + $0x8] sm:$0xff]  ;;  %v476_v16 = vlaneseq }
  0x2c   : > { %1810 = vmatprep.subr.mxu1 %v2105_v9  ;;  %1818 = vmatprep.mubr.msk.f32.mxu1 %vm2106_vm2, %v2105_v9  ;;  %v486_v12 = vld [vmem:[%s2268_s28] sm:$0xff]  ;;  %vm563_vm3 = vcmask 785408   ;;  %s2107_s9 = smov 96   ;;  %s2108_s30 = smov 120   ;;  %vm570_vm4 = vcmask 64512   ;;  %vm907_vm5 = vcmask 130112  }
  0x2d   : > { %1811 = vmatpush3.msra.mxu1 %v489_v8  ;;  %1831 = vmatprep.subr.mxu0 %v2105_v9  ;;  %v2310_v17 = vshrl.u32 %v476_v16, 7  ;;  %v2314_v19 = vld [vmem:[%s2257_s14] sm:$0xff]  ;;  %s2109_s14 = smov 88   ;;  %s2110_s16 = smov 80   ;;  %vm1082_vm6 = vcmask 195712   ;;  %vm1257_vm7 = vcmask 261312  }
  0x2e   : > { %1812 = vmatprep.subr.mxu1 %v2105_v9  ;;  %1833 = vmatprep.mubr.msk.f32.mxu0 %vm2106_vm2, %v2105_v9  ;;  %s2111_s21 = smov 72   ;;  %s2112_s22 = smov 112   ;;  %vm1457_vm8 = vcmask 523264  }
  0x2f   : > { %1813 = vmatpush3.msra.mxu1 %v488_v10  ;;  %v478_v18 = vsub.s32 0, %v2310_v17  ;;  %v483_v20 = vsub.s32 1, %v2310_v17  ;;  %s2113_s27 = smov 104   ;;  %s2114_s24 = smov 64  }
  0x30   : > { %1814 = vmatprep.subr.mxu1 %v2105_v9  ;;  %s2115_s28 = smov 48   ;;  %s2116_s18 = smov 40  }
  0x31   : > { %v2290_v1 = vld [vmem:[%s2285_s11] sm:$0xff]  ;;  %1815 = vmatpush3.msra.mxu1 %v487_v11  ;;  %v479_v21 = vrot.slane %v2314_v19, %v478_v18  ;;  %v484_v24 = vrot.slane %v2314_v19, %v483_v20  ;;  %s2117_s23 = smov 56   ;;  %s2118_s15 = smov 8  }
  0x32   : > { %v462_v2 = vsel %vm461_vm1, %v2290_v1, 0.0  ;;  %1816 = vmatprep.subr.mxu1 %v2105_v9  ;;  %s2119_s20 = smov 16   ;;  %s2120_s25 = smov 24  }
  0x33   : > { %463 = vadd.xlane.f32.xlu0 %v462_v2  ;;  %1817 = vmatpush3.msra.mxu1 %v486_v12  ;;  %p1759_p1 = scmp.ne.s32.totalorder %s2087_s12, 1 }
  0x34   : > { %1821 = vmatprep.subr.mxu1 %v2105_v9 }
  0xbc   : > { %v464_v3 = vpop.xlane.xlu0 %463 }
  0xbd   : > { %v466_v4 = vmul.f32 0.03125, %v464_v3 }
  0xbf   : > { %v467_v5 = vsub.f32 %v2290_v1, %v466_v4 }
  0xc1   : > { %v468_v6 = vmul.f32 %v467_v5, %v467_v5 }
  0xc3   : > { %v469_v7 = vsel %vm461_vm1, %v468_v6, 0.0 }
  0xc4   : > { %470 = vadd.xlane.f32.xlu0 %v469_v7 }
 0x14d   : > { %v471_v13 = vpop.xlane.xlu0 %470 }
 0x14e   : > { %v472_v14 = vmul.f32 0.03125, %v471_v13 }
 0x150   : > { %v473_v15 = vadd.f32 1e-05, %v472_v14 }
 0x152   : > { %1989 = vrsqrt.f32 %v473_v15 }
 0x15f   : > { %v1990_v22 = vpop.eup %1989 }
 0x160   : > { %v475_v23 = vmul.f32 %v1990_v22, %v467_v5 }
 0x162   : > { %v480_v25 = vmul.f32 %v479_v21, %v475_v23 }
 0x164   : > { %v485_v26 = vadd.f32 %v484_v24, %v480_v25 }
 0x166   : > { %1819 = vmatmul.mubr.msk.f32.vlgmr.msra.gmra.mxu1 %vm461_vm1, %v485_v26 }
 0x167   : > { %1823 = vmatprep.mubr.msk.f32.mxu1 %vm2106_vm2, %v2105_v9 }
 0x226   : > { %v559_v27 = vpop.f32.mrf.mxu1 }
 0x227   : > { %564 = vst.msk [vmem:[#allocation2] sm:$0xff] %vm563_vm3, %v559_v27 }
 0x228   : > { %v1820_v28 = vpop.f32.mrf.mxu1 }
 0x229   : > { %v1263_v28 = vld [vmem:[%s2273_s17 + $0x18] sm:$0xff] }
 0x22e   : > { %v2322_v29 = vld [vmem:[#allocation2] sm:$0xff] }
 0x22f   : > { %568 = vrot.lane.b32.xlu1 %v2322_v29, %s2107_s9  ;;  %v566_v30 = vmul.f32 0.35355338, %v2322_v29  ;;  %s2528_s9 = scalar_lea.vmem %s2495_s2, %s2248_s29 }
 0x231   : > { %737 = vrot.lane.b32.xlu0 %v566_v30, %s2108_s30 }
 0x233   : > { %740 = vrot.lane.b32.xlu1 %v2322_v29, %s2109_s14 }
 0x237   : > { %915 = vrot.lane.b32.xlu1 %v2322_v29, %s2110_s16 }
 0x23b   : > { %1090 = vrot.lane.b32.xlu1 %v2322_v29, %s2111_s21 }
 0x23f   : > { %912 = vrot.lane.b32.xlu1 %v566_v30, %s2112_s22 }
 0x243   : > { %1087 = vrot.lane.b32.xlu1 %v566_v30, %s2113_s27 }
 0x2a1   : > { %v569_v31 = vpop.permute.xlu1 %568 }
 0x2a2   : > { %1822 = vmatpush3.xpose.msk.msra.mxu1 %vm570_vm4, %v569_v31  ;;  %v1261_v31 = vld [vmem:[%s2273_s17 + $0x8] sm:$0xff] }
 0x2a3   : > { %1826 = vmatprep.subr.mxu1 %v2105_v9  ;;  %v738_v33 = vpop.permute.xlu0 %737 }
 0x2a5   : > { %v741_v32 = vpop.permute.xlu1 %740  ;;  %1824 = vmatmul.mubr.msk.f32.vlgmr.msra.gmra.mxu1 %vm570_vm4, %v566_v30 }
 0x2a6   : > { %1832 = vmatpush3.xpose.msk.msra.mxu0 %vm570_vm4, %v741_v32  ;;  %1828 = vmatprep.mubr.msk.f32.mxu1 %vm2106_vm2, %v2105_v9 }
 0x2a7   : > { %1841 = vmatprep.subr.mxu0 %v2105_v9 }
 0x2a9   : > { %1834 = vmatmul.mubr.msk.f32.vlgmr.msra.gmra.mxu0 %vm570_vm4, %v738_v33  ;;  %v916_v34 = vpop.permute.xlu1 %915  ;;  %v1260_v33 = vld [vmem:[%s2273_s17] sm:$0xff] }
 0x2aa   : > { %1842 = vmatpush3.xpose.msk.msra.mxu0 %vm570_vm4, %v916_v34  ;;  %1843 = vmatprep.mubr.msk.f32.mxu0 %vm2106_vm2, %v2105_v9 }
 0x2ab   : > { %1851 = vmatprep.subr.mxu0 %v2105_v9 }
 0x2ad   : > { %v1091_v35 = vpop.permute.xlu1 %1090 }
 0x2b1   : > { %v913_v36 = vpop.permute.xlu1 %912 }
 0x2b2   : > { %1844 = vmatmul.mubr.msk.f32.vlgmr.msra.gmra.mxu0 %vm570_vm4, %v913_v36 }
 0x2b3   : > { %1852 = vmatpush3.xpose.msk.msra.mxu0 %vm570_vm4, %v1091_v35  ;;  %1853 = vmatprep.mubr.msk.f32.mxu0 %vm2106_vm2, %v2105_v9 }
 0x2b4   : > { %1861 = vmatprep.subr.mxu0 %v2105_v9 }
 0x2b5   : > { %v1088_v37 = vpop.permute.xlu1 %1087 }
 0x2b6   : > { %1854 = vmatmul.mubr.msk.f32.vlgmr.msra.gmra.mxu0 %vm570_vm4, %v1088_v37 }
 0x2b7   : > { %1869 = vmatprep.mubr.msk.f32.mxu0 %vm2106_vm2, %v2105_v9  ;;  %1862 = vmatpush3.msra.mxu0 %v1263_v28 }
 0x2b8   : > { %1863 = vmatprep.subr.mxu0 %v2105_v9 }
 0x365   : > { %v642_v38 = vpop.f32.mrf.mxu1 }
 0x366   : > { %v646_v39 = vsel %vm570_vm4, %v642_v38, -inf }
 0x367   : > { %647 = vmax.xlane.f32.xlu1 %v646_v39  ;;  %v1825_v40 = vpop.f32.mrf.mxu1 }
 0x369   : > { %v812_v41 = vpop.f32.mrf.mxu0 }
 0x36a   : > { %v816_v42 = vsel %vm570_vm4, %v812_v41, -inf }
 0x36b   : > { %817 = vmax.xlane.f32.xlu0 %v816_v42  ;;  %v1835_v43 = vpop.f32.mrf.mxu0  ;;  %v1266_v42 = vsub.s32 2, %v2310_v17 }
 0x36d   : > { %v1267_v43 = vrot.slane %v2314_v19, %v1266_v42 }
 0x372   : > { %v987_v44 = vpop.f32.mrf.mxu0 }
 0x373   : > { %v991_v45 = vsel %vm570_vm4, %v987_v44, -inf }
 0x374   : > { %v1845_v46 = vpop.f32.mrf.mxu0  ;;  %992 = vmax.xlane.f32.xlu1 %v991_v45 }
 0x376   : > { %v1162_v47 = vpop.f32.mrf.mxu0 }
 0x377   : > { %v1166_v48 = vsel %vm570_vm4, %v1162_v47, -inf }
 0x378   : > { %1167 = vmax.xlane.f32.xlu0 %v1166_v48  ;;  %v1855_v49 = vpop.f32.mrf.mxu0 }
 0x385   : > { %657 = vrot.lane.b32.xlu1 %v2322_v29, %s2114_s24 }
 0x3f0   : > { %v648_v50 = vpop.xlane.xlu1 %647 }
 0x3f1   : > { %v649_v51 = vsub.f32 %v642_v38, %v648_v50 }
 0x3f3   : > { %v650_v52 = vmul.f32 1.442695, %v649_v51 }
 0x3f4   : > { %v818_v53 = vpop.xlane.xlu0 %817 }
 0x3f5   : > { %1991 = vpow2.f32 %v650_v52  ;;  %v819_v54 = vsub.f32 %v812_v41, %v818_v53 }
 0x3f7   : > { %v820_v55 = vmul.f32 1.442695, %v819_v54  ;;  %v1368_v54 = vld [vmem:[%s2278_s19 + $0x18] sm:$0xff] }
 0x3f9   : > { %1993 = vpow2.f32 %v820_v55  ;;  %v1366_v55 = vld [vmem:[%s2278_s19 + $0x8] sm:$0xff] }
 0x3fd   : > { %v993_v56 = vpop.xlane.xlu1 %992 }
 0x3fe   : > { %v994_v57 = vsub.f32 %v987_v44, %v993_v56  ;;  %v1365_v56 = vld [vmem:[%s2278_s19] sm:$0xff] }
 0x400   : > { %v995_v58 = vmul.f32 1.442695, %v994_v57  ;;  %v1456_v57 = vld [vmem:[%s2283_s26 + $0x38] sm:$0xff] }
 0x401   : > { %v1168_v59 = vpop.xlane.xlu0 %1167  ;;  %v658_v60 = vpop.permute.xlu1 %657 }
 0x402   : > { %v1992_v61 = vpop.eup %1991  ;;  %1995 = vpow2.f32 %v995_v58  ;;  %v1169_v62 = vsub.f32 %v1162_v47, %v1168_v59  ;;  %1827 = vmatpush3.msra.mxu1 %v658_v60  ;;  %v1455_v58 = vld [vmem:[%s2283_s26 + $0x30] sm:$0xff]  ;;  %v1454_v59 = vld [vmem:[%s2283_s26 + $0x28] sm:$0xff]  ;;  %v1453_v60 = vld [vmem:[%s2283_s26 + $0x20] sm:$0xff] }
 0x403   : > { %v652_v63 = vsel %vm570_vm4, %v1992_v61, 0.0  ;;  %1836 = vmatprep.subr.mxu1 %v2105_v9 }
 0x404   : > { %v1170_v0 = vmul.f32 1.442695, %v1169_v62  ;;  %653 = vadd.xlane.f32.xlu1 %v652_v63 }
 0x406   : > { %v1994_v2 = vpop.eup %1993  ;;  %1997 = vpow2.f32 %v1170_v0 }
 0x407   : > { %v822_v3 = vsel %vm570_vm4, %v1994_v2, 0.0 }
 0x408   : > { %823 = vadd.xlane.f32.xlu0 %v822_v3  ;;  %v1362_v3 = vsub.s32 4, %v2310_v17 }
 0x40f   : > { %v1996_v4 = vpop.eup %1995 }
 0x410   : > { %v997_v5 = vsel %vm570_vm4, %v1996_v4, 0.0 }
 0x411   : > { %998 = vadd.xlane.f32.xlu1 %v997_v5 }
 0x413   : > { %v1998_v6 = vpop.eup %1997 }
 0x414   : > { %v1172_v7 = vsel %vm570_vm4, %v1998_v6, 0.0 }
 0x415   : > { %1173 = vadd.xlane.f32.xlu0 %v1172_v7  ;;  %v1363_v7 = vrot.slane %v2314_v19, %v1362_v3 }
 0x422   : > { %1002 = vrot.lane.b32.xlu1 %v2322_v29, %s2115_s28 }
 0x426   : > { %1177 = vrot.lane.b32.xlu1 %v2322_v29, %s2116_s18 }
 0x42b   : > { %827 = vrot.lane.b32.xlu0 %v2322_v29, %s2117_s23  ;;  %v1262_v29 = vld [vmem:[%s2273_s17 + $0x10] sm:$0xff] }
 0x42c   : > { %1864 = vmatpush3.msra.mxu0 %v1262_v29 }
 0x42d   : > { %1865 = vmatprep.subr.mxu0 %v2105_v9 }
 0x42e   : > { %1866 = vmatpush3.msra.mxu0 %v1261_v31 }
 0x42f   : > { %1867 = vmatprep.subr.mxu0 %v2105_v9 }
 0x430   : > { %1868 = vmatpush3.msra.mxu0 %v1260_v33 }
 0x431   : > { %1883 = vmatprep.subr.mxu0 %v2105_v9 }
 0x48d   : > { %v654_v8 = vpop.xlane.xlu1 %653 }
 0x48e   : > { %1999 = vrcp.f32 %v654_v8 }
 0x491   : > { %v824_v10 = vpop.xlane.xlu0 %823 }
 0x492   : > { %2001 = vrcp.f32 %v824_v10 }
 0x49a   : > { %v999_v11 = vpop.xlane.xlu1 %998 }
 0x49b   : > { %v2000_v12 = vpop.eup %1999  ;;  %2003 = vrcp.f32 %v999_v11  ;;  %v1451_v11 = vld [vmem:[%s2283_s26 + $0x10] sm:$0xff] }
 0x49c   : > { %v656_v13 = vmul.f32 %v2000_v12, %v1992_v61  ;;  %v1452_v61 = vld [vmem:[%s2283_s26 + $0x18] sm:$0xff]  ;;  %v1450_v12 = vld [vmem:[%s2283_s26 + $0x8] sm:$0xff] }
 0x49e   : > { %v1174_v14 = vpop.xlane.xlu0 %1173  ;;  %1829 = vmatmul.mubr.msk.f32.vlgmr.msra.gmra.mxu1 %vm570_vm4, %v656_v13  ;;  %v1003_v20 = vpop.permute.xlu1 %1002  ;;  %v1449_v13 = vld [vmem:[%s2283_s26] sm:$0xff] }
 0x49f   : > { %v2002_v15 = vpop.eup %2001  ;;  %2005 = vrcp.f32 %v1174_v14  ;;  %1838 = vmatprep.mubr.msk.f32.mxu1 %vm2106_vm2, %v2105_v9  ;;  %v1756_v14 = vld [vmem:[%s2528_s9] ss:$0 sm:$0xff] }
 0x4a0   : > { %v826_v18 = vmul.f32 %v2002_v15, %v1994_v2  ;;  %v1357_v2 = vsub.s32 3, %v2310_v17 }
 0x4a2   : > { %v828_v16 = vpop.permute.xlu0 %827  ;;  %v1178_v23 = vpop.permute.xlu1 %1177 }
 0x4a3   : > { %1837 = vmatpush3.msra.mxu1 %v828_v16 }
 0x4a4   : > { %1839 = vmatmul.mubr.msk.f32.vlgmr.msra.gmra.mxu1 %vm570_vm4, %v826_v18  ;;  %1846 = vmatprep.subr.mxu1 %v2105_v9 }
 0x4a5   : > { %1847 = vmatpush3.msra.mxu1 %v1003_v20  ;;  %1848 = vmatprep.mubr.msk.f32.mxu1 %vm2106_vm2, %v2105_v9 }
 0x4a6   : > { %1856 = vmatprep.subr.mxu1 %v2105_v9 }
 0x4a8   : > { %v2004_v21 = vpop.eup %2003 }
 0x4a9   : > { %v1001_v22 = vmul.f32 %v2004_v21, %v1996_v4  ;;  %v1358_v4 = vrot.slane %v2314_v19, %v1357_v2  ;;  %v1534_v21 = vsub.s32 5, %v2310_v17 }
 0x4ab   : > { %1849 = vmatmul.mubr.msk.f32.vlgmr.msra.gmra.mxu1 %vm570_vm4, %v1001_v22  ;;  %v1535_v22 = vrot.slane %v2314_v19, %v1534_v21 }
 0x4ac   : > { %v2006_v24 = vpop.eup %2005  ;;  %1857 = vmatpush3.msra.mxu1 %v1178_v23  ;;  %1858 = vmatprep.mubr.msk.f32.mxu1 %vm2106_vm2, %v2105_v9 }
 0x4ad   : > { %v1176_v25 = vmul.f32 %v2006_v24, %v1998_v6  ;;  %1872 = vmatprep.subr.mxu1 %v2105_v9 }
 0x4af   : > { %1859 = vmatmul.mubr.msk.f32.vlgmr.msra.gmra.mxu1 %vm570_vm4, %v1176_v25 }
 0x4b0   : > { %1880 = vmatprep.mubr.msk.f32.mxu1 %vm2106_vm2, %v2105_v9  ;;  %1873 = vmatpush3.msra.mxu1 %v1368_v54 }
 0x4b1   : > { %1874 = vmatprep.subr.mxu1 %v2105_v9 }
 0x55e   : > { %v729_v26 = vpop.f32.mrf.mxu1 }
 0x55f   : > { %733 = vst.msk [vmem:[#allocation3] sm:$0xff] %vm570_vm4, %v729_v26 }
 0x560   : > { %v1830_v27 = vpop.f32.mrf.mxu1 }
 0x564   : > { %v899_v30 = vpop.f32.mrf.mxu1 }
 0x565   : > { %904 = vrot.lane.b32.xlu0 %v899_v30, %s2118_s15 }
 0x566   : > { %v1840_v32 = vpop.f32.mrf.mxu1 }
 0x56b   : > { %v1074_v34 = vpop.f32.mrf.mxu1 }
 0x56c   : > { %1079 = vrot.lane.b32.xlu1 %v1074_v34, %s2119_s20 }
 0x56d   : > { %v1850_v35 = vpop.f32.mrf.mxu1 }
 0x56f   : > { %v1249_v36 = vpop.f32.mrf.mxu1 }
 0x570   : > { %1254 = vrot.lane.b32.xlu0 %v1249_v36, %s2120_s25 }
 0x571   : > { %v1860_v37 = vpop.f32.mrf.mxu1 }
 0x5d7   : > { %v905_v38 = vpop.permute.xlu0 %904 }
 0x5d8   : > { %908 = vst.msk [vmem:[#allocation3] sm:$0xff] %vm907_vm5, %v905_v38 }
 0x5de   : > { %v1080_v39 = vpop.permute.xlu1 %1079 }
 0x5df   : > { %1083 = vst.msk [vmem:[#allocation3] sm:$0xff] %vm1082_vm6, %v1080_v39 }
 0x5e2   : > { %v1255_v40 = vpop.permute.xlu0 %1254 }
 0x5e3   : > { %1258 = vst.msk [vmem:[#allocation3] sm:$0xff] %vm1257_vm7, %v1255_v40 }
 0x5ea   : > { %v1259_v41 = vld [vmem:[#allocation3] sm:$0xff] }
 0x5eb   : > { %1870 = vmatmul.mubr.msk.f32.vlgmr.msra.gmra.mxu0 %vm461_vm1, %v1259_v41 }
 0x5ec   : > { %1899 = vmatprep.mubr.msk.f32.mxu0 %vm2106_vm2, %v2105_v9  ;;  %1884 = vmatpush3.msra.mxu0 %v1456_v57 }
 0x5ed   : > { %1885 = vmatprep.subr.mxu0 %v2105_v9 }
 0x5ee   : > { %1886 = vmatpush3.msra.mxu0 %v1455_v58 }
 0x5ef   : > { %1887 = vmatprep.subr.mxu0 %v2105_v9 }
 0x5f0   : > { %1888 = vmatpush3.msra.mxu0 %v1454_v59 }
 0x5f1   : > { %1889 = vmatprep.subr.mxu0 %v2105_v9 }
 0x5f2   : > { %1890 = vmatpush3.msra.mxu0 %v1453_v60 }
 0x5f3   : > { %1891 = vmatprep.subr.mxu0 %v2105_v9 }
 0x5f4   : > { %1892 = vmatpush3.msra.mxu0 %v1452_v61 }
 0x5f5   : > { %1893 = vmatprep.subr.mxu0 %v2105_v9 }
 0x5f6   : > { %1894 = vmatpush3.msra.mxu0 %v1451_v11 }
 0x5f7   : > { %1895 = vmatprep.subr.mxu0 %v2105_v9 }
 0x5f8   : > { %1896 = vmatpush3.msra.mxu0 %v1450_v12 }
 0x5f9   : > { %1897 = vmatprep.subr.mxu0 %v2105_v9 }
 0x5fa   : > { %1898 = vmatpush3.msra.mxu0 %v1449_v13 }
 0x6ab   : > { %v1337_v44 = vpop.f32.mrf.mxu0 }
 0x6ac   : > { %v1338_v45 = vadd.f32 %v1337_v44, %v1267_v43 }
 0x6ad   : > { %v1871_v46 = vpop.f32.mrf.mxu0 }
 0x6ae   : > { %v2392_v47 = vadd.f32 %v1338_v45, %v2290_v1  ;;  %v1367_v1 = vld [vmem:[%s2278_s19 + $0x10] sm:$0xff] }
 0x6af   : > { %1875 = vmatpush3.msra.mxu1 %v1367_v1 }
 0x6b0   : > { %v1342_v48 = vsel %vm461_vm1, %v2392_v47, 0.0  ;;  %1876 = vmatprep.subr.mxu1 %v2105_v9 }
 0x6b1   : > { %1343 = vadd.xlane.f32.xlu1 %v1342_v48  ;;  %1877 = vmatpush3.msra.mxu1 %v1366_v55 }
 0x6b2   : > { %1878 = vmatprep.subr.mxu1 %v2105_v9 }
 0x6b3   : > { %1879 = vmatpush3.msra.mxu1 %v1365_v56 }
 0x73a   : > { %v1344_v49 = vpop.xlane.xlu1 %1343 }
 0x73b   : > { %v1345_v50 = vmul.f32 0.03125, %v1344_v49 }
 0x73d   : > { %v1346_v51 = vsub.f32 %v2392_v47, %v1345_v50 }
 0x73f   : > { %v1347_v52 = vmul.f32 %v1346_v51, %v1346_v51 }
 0x741   : > { %v1348_v53 = vsel %vm461_vm1, %v1347_v52, 0.0 }
 0x742   : > { %1349 = vadd.xlane.f32.xlu0 %v1348_v53 }
 0x7cb   : > { %v1350_v62 = vpop.xlane.xlu0 %1349 }
 0x7cc   : > { %v1351_v63 = vmul.f32 0.03125, %v1350_v62 }
 0x7ce   : > { %v1352_v0 = vadd.f32 1e-05, %v1351_v63 }
 0x7d0   : > { %2007 = vrsqrt.f32 %v1352_v0 }
 0x7dd   : > { %v2008_v5 = vpop.eup %2007 }
 0x7de   : > { %v1354_v6 = vmul.f32 %v2008_v5, %v1346_v51 }
 0x7e0   : > { %v1359_v8 = vmul.f32 %v1358_v4, %v1354_v6 }
 0x7e2   : > { %v1364_v10 = vadd.f32 %v1363_v7, %v1359_v8 }
 0x7e4   : > { %1881 = vmatmul.mubr.msk.f32.vlgmr.msra.gmra.mxu1 %vm461_vm1, %v1364_v10 }
 0x8a4   : > { %v1444_v15 = vpop.f32.mrf.mxu1 }
 0x8a5   : > { %v1445_v16 = vadd.f32 %v1756_v14, %v1444_v15 }
 0x8a6   : > { %v1882_v18 = vpop.f32.mrf.mxu1 }
 0x8a7   : > { %v1448_v20 = vmax.f32 %v1445_v16, 0.0 }
 0x8a9   : > { %1900 = vmatmul.mubr.msk.f32.vlgmr.msra.gmra.mxu0 %vm1457_vm8, %v1448_v20 }
 0x969   : > { %v1527_v23 = vpop.f32.mrf.mxu0 }
 0x96a   : > { %v1531_v24 = vadd.f32 %v1527_v23, %v2392_v47  ;;  %1541 = sbr.rel (%p1759_p1) target bundleno = 2724 (0xaa4), region = 64 }
 0x96b   : > { %v1901_v9 = vpop.f32.mrf.mxu0 }
 0x96c   : > { %v1536_v25 = vadd.f32 %v1535_v22, %v1531_v24 }
 0x96e   : > { %1537 = vst.msk [vmem:[%s2285_s11] sm:$0xff] %vm461_vm1, %v1536_v25 }
 0x96f   : > { %v1544_v26 = vsel %vm461_vm1, %v1536_v25, 0.0  ;;  %v1760_v34 = vld [vmem:[%s2500_s7] ss:$0 sm:$0xff] }
 0x970   : > { %1545 = vadd.xlane.f32.xlu0 %v1544_v26  ;;  %v1761_v36 = vld [vmem:[%s2501_s8] ss:$0 sm:$0xff] }
 0x9f9   : > { %v1546_v27 = vpop.xlane.xlu0 %1545 }
 0x9fa   : > { %v1547_v28 = vmul.f32 0.03125, %v1546_v27 }
 0x9fc   : > { %v1548_v29 = vsub.f32 %v1536_v25, %v1547_v28 }
 0x9fe   : > { %v1549_v17 = vmul.f32 %v1548_v29, %v1548_v29 }
 0xa00   : > { %v1550_v19 = vsel %vm461_vm1, %v1549_v17, 0.0 }
 0xa01   : > { %1551 = vadd.xlane.f32.xlu0 %v1550_v19 }
 0xa8a   : > { %v1552_v30 = vpop.xlane.xlu0 %1551 }
 0xa8b   : > { %v1553_v31 = vmul.f32 0.03125, %v1552_v30 }
 0xa8d   : > { %v1554_v32 = vadd.f32 1e-05, %v1553_v31 }
 0xa8f   : > { %2009 = vrsqrt.f32 %v1554_v32 }
 0xa9c   : > { %v2010_v33 = vpop.eup %2009 }
 0xa9d   : > { %v1556_v35 = vmul.f32 %v2010_v33, %v1548_v29 }
 0xa9f   : > { %v1563_v37 = vmul.f32 %v1760_v34, %v1556_v35 }
 0xaa1   : > { %v1570_v38 = vadd.f32 %v1761_v36, %v1563_v37 }
 0xaa3   : > { %1571 = vst.msk [vmem:[%s2285_s11] sm:$0xff] %vm461_vm1, %v1570_v38 }
 0xaa4 PF: > { %s1763_s16 = sshll.u32 %s2091_s13, 7  ;;  %s2530_s27 = sld [smem:[#allocation17_spill]] }
 0xaa5   : > { %s1586_s28 = sshll.u32 %s2285_s11, 4  ;;  %s2531_s18 = sand.u32 1, %s2079_s10   ;;  %s1587_s28 = int_to_ptr.vmem [resolvable:$true] %s1586_s28 }
 0xaa6   : > { %s1573_s23 = scalar_lea.sflag [#allocation5], %s2531_s18  ;;  %s2011_s15 = scalar_lea.vmem %s1587_s28, 128 }
 0xaa7   : > { %p2012_p2 = scmp.ne.s32.totalorder %s1587_s28, %s2011_s15  ;;  %s2121_s20 = smov [#allocation4]  }
 0xaa8   : > { %s2015_s25 = sshll.u32 %s2121_s20, 4  ;;  %s2016_s25 = int_to_ptr.vmem [resolvable:$false] %s2015_s25 }
 0xaa9   : > { %p2013_p4 = pnand %p2012_p2, %p2221_p3  ;;  %s2017_s17 = scalar_lea.vmem %s2016_s25, 256 }
 0xaaa   : > { %s1584_s24 = scalar_lea.hbm %s2530_s27, %s1763_s16  ;;  %p2018_p6 = scmp.lt.s32.totalorder %s1587_s28, %s2016_s25 }
 0xaab   : > { %p2014_p5 = pneg %p2013_p4  ;;  %p2019_p7 = scmp.lt.s32.totalorder %s2017_s17, %s2011_s15 }
 0xaad   : > { %p2020_p8 = por %p2019_p7, %p2018_p6 }
 0xaaf   : > { %p2021_p10 = pnand %p2020_p8, %p2014_p5 }
 0xab1   : > { %2024 = shalt.err (!%p2021_p10)
}
 0xab2   : > { %s2025_s13 = scalar_lea.hbm %s1584_s24, 128  ;;  %s2029_s9 = scalar_lea.hbm %s2530_s27, 256 }
 0xab3   : > { %p2026_p11 = scmp.ne.s32.totalorder %s1584_s24, %s2025_s13  ;;  %p2030_p0 = scmp.lt.s32.totalorder %s1584_s24, %s2530_s27 }
 0xab4   : > { %p2031_p1 = scmp.lt.s32.totalorder %s2029_s9, %s2025_s13 }
 0xab5   : > { %p2027_p12 = pnand %p2026_p11, %p2221_p3 }
 0xab6   : > { %p2032_p2 = por %p2031_p1, %p2030_p0 }
 0xab7   : > { %p2028_p13 = pneg %p2027_p12 }
 0xab9   : > { %p2033_p4 = pnand %p2032_p2, %p2028_p13 }
 0xabb   : > { %2036 = shalt.err (!%p2033_p4)
}
 0xabc   : > { %1902 = dma.vmem_to_hbm [thread:$0]  (%p2221_p3), %s1587_s28, 128, %s1584_s24, %s1573_s23  }
 0xabd PF: > { %s2532_s12 = sld [smem:[#allocation11_spill]] }
 0xabe   : > { %s2533_s30 = sld [smem:[#allocation7_spill]] }
 0xac3   : > { %p1908_p5 = scmp.ge.s32.totalorder %s2532_s12, 2 }
 0xac4   : > { %s1598_s21 = sand.u32 1, %s2533_s30  }
 0xac5   : > { %p1905_p6 = pnand %p1908_p5, %p2231_p9  ;;  %s1599_s22 = scalar_lea.sflag [#allocation5], %s1598_s21 }
 0xac7   : > { %p1906_p7 = pneg %p1905_p6 }
 0xac9   : > { %2070 = dma.done.wait (%p1906_p7), %s1599_s22, 128  }
 0xaca   : > { %2072 = vsyncadd (%p1906_p7), %s1599_s22, 4294967168  ;;  %s22_s16 = sadd.s32 1, %s2532_s12   ;;  %s2535_s18 = sld [smem:[#allocation8_spill]] }
 0xacb   : > { %p19_p8 = scmp.ge.s32.totalorder %s22_s16, 6   ;;  %s2536_s11 = sld [smem:[#allocation16_spill]] }
 0xacc   : > { %s2537_s12 = sld [smem:[#allocation9_spill]]  ;;  %s2541_s30 = smov %s2079_s10 }
 0xacd   : > { %s2538_s13 = sld [smem:[#allocation10_spill]]  ;;  %21 = sbr.rel (!%p19_p8) target bundleno = 7 (0x7), region = 117 }
 0xace   : > { %s2539_s14 = sld [smem:[#allocation12_spill]] }
 0xacf   : > { %s2540_s15 = sld [smem:[#allocation14_spill]] }
 0xad0   : > { %s2542_s10 = smov %s2535_s18 }
 0xad2   :  { %1604 = vsyncpa [#allocation5], 1 }
 0xad3   :  { %1606 = vsyncpa [#allocation5 + $0x1], 1 }

</bundles_post_ra>
